<compile_context>
chip_gen: v6e
topology: v6e:2x2x1
jax: 0.10.0
libtpu: 0.0.40
codegen_flags: <defaults>
</compile_context>

<pallas_src>
import functools

import jax
import jax.numpy as jnp
from jax.experimental import pallas as pl
from jax.experimental.pallas import tpu as pltpu


# ----------------------------- per-chip budgets ------------------------------

def _round_up(x, m):
    return ((x + m - 1) // m) * m


def _cdiv(a, b):
    return (a + b - 1) // b


def _vmem_capacity_bytes():
    # 128 MiB on v5e/v6e, 64 MiB per TensorCore on v7x.  Fall back to the
    # conservative 64 MiB if the query is unavailable so budgets stay safe.
    try:
        cap = int(pltpu.get_tpu_info().vmem_capacity_bytes)
        if 32 * 1024 * 1024 <= cap <= 256 * 1024 * 1024:
            return cap
    except Exception:
        pass
    return 64 * 1024 * 1024


_VMEM_CAP = _vmem_capacity_bytes()
_VMEM_LIMIT = int(_VMEM_CAP * 3) // 4      # scoped-VMEM cap handed to Mosaic
_TILE_BUDGET = _VMEM_CAP // 4              # per-kernel working-set budget


def _pick_exp_dtype():
    # bf16 exp on bf16-capable EUPs (v6e/v7x); keep f32 exp on v5-and-older.
    try:
        kind = jax.devices()[0].device_kind.lower()
    except Exception:
        return jnp.bfloat16
    if ("v5" in kind) or ("v4" in kind) or ("v3" in kind):
        return jnp.float32
    return jnp.bfloat16


_EXP_DTYPE = _pick_exp_dtype()


# ----------------------------- 1x1 conv as matmul ---------------------------

def _matmul_bias_kernel(x_ref, w_ref, b_ref, o_ref):
    acc = jnp.dot(x_ref[...], w_ref[...], preferred_element_type=jnp.float32)
    o_ref[...] = (acc + b_ref[...]).astype(o_ref.dtype)


def _matmul_bias_residual_kernel(x_ref, w_ref, b_ref, r_ref, o_ref):
    # Fuses the final residual add into the projection matmul (saves one full
    # HBM read+write of the activation vs. a separate XLA add).
    acc = jnp.dot(x_ref[...], w_ref[...], preferred_element_type=jnp.float32)
    o_ref[...] = (acc + b_ref[...] + r_ref[...]).astype(o_ref.dtype)


def _pick_row_tile(n, cin, cout):
    # Big row tiles for HBM roofline; grid >= 2 (and preferably even, so both
    # v7x TensorCores get work); working set bounded by the per-chip budget.
    lanes_in = _round_up(cin, 128)
    lanes_out = _round_up(cout, 128)

    def fits(t):
        io = 2 * t * (lanes_in + 2 * lanes_out) * 4      # x, out, residual (2-deep)
        w = 2 * _round_up(cin, 8) * lanes_out * 4        # resident weight
        return io + w <= _TILE_BUDGET

    cands = [c for c in (2048, 1024, 512, 256, 128, 64, 32, 16, 8) if fits(c)]
    for c in cands:                                      # prefer even grid length
        if n >= 2 * c and _cdiv(n, c) % 2 == 0:
            return c
    for c in cands:
        if n >= 2 * c:
            return c
    return 8


def matmul_bias(x, w, b, residual=None):
    # x: (N, Cin) @ w: (Cin, Cout) + b: (1, Cout) [+ residual: (N, Cout)]
    n, cin = x.shape
    cout = w.shape[1]
    tn = _pick_row_tile(n, cin, cout)
    grid = (_cdiv(n, tn),)                               # cdiv grid: no grid=1 tail trap
    x_spec = pl.BlockSpec((tn, cin), lambda i: (i, 0))
    w_spec = pl.BlockSpec((cin, cout), lambda i: (0, 0))   # weight stays resident
    b_spec = pl.BlockSpec((1, cout), lambda i: (0, 0))     # bias stays resident
    o_spec = pl.BlockSpec((tn, cout), lambda i: (i, 0))
    cp = pltpu.CompilerParams(dimension_semantics=("parallel",),
                              vmem_limit_bytes=_VMEM_LIMIT)
    out_shape = jax.ShapeDtypeStruct((n, cout), x.dtype)
    if residual is None:
        return pl.pallas_call(
            _matmul_bias_kernel, out_shape=out_shape, grid=grid,
            in_specs=[x_spec, w_spec, b_spec], out_specs=o_spec,
            compiler_params=cp)(x, w, b)
    return pl.pallas_call(
        _matmul_bias_residual_kernel, out_shape=out_shape, grid=grid,
        in_specs=[x_spec, w_spec, b_spec, o_spec], out_specs=o_spec,
        compiler_params=cp)(x, w, b, residual)


# ------------------------------ window attention ----------------------------

def _window_attn_kernel(*refs, scale, exp_dtype, masked):
    if masked:
        mask_ref, q_ref, k_ref, v_ref, o_ref = refs
    else:
        q_ref, k_ref, v_ref, o_ref = refs
    # Blocks are lane-dense (Gb, hd, Lp): Lp = packed_windows * window_len lanes.
    q = (q_ref[...] * scale).astype(jnp.bfloat16)          # scale the small side
    k = k_ref[...].astype(jnp.bfloat16)
    v = v_ref[...].astype(jnp.bfloat16)
    # Q^T K on the MXU: bf16 operands, f32 accumulation.  (Gb, Lp, Lp)
    s = jnp.einsum("gdl,gdm->glm", q, k, preferred_element_type=jnp.float32)
    if masked:
        # Block-diagonal mask keeps packed windows independent (applied before
        # the row max so masked lanes cannot dominate the softmax).
        s = jnp.where(mask_ref[...][None] != 0.0, s, -jnp.inf)
    m = jnp.max(s, axis=-1, keepdims=True)
    p = jnp.exp((s - m).astype(exp_dtype))                 # bf16 exp on v6e/v7x
    l_sum = jnp.sum(p.astype(jnp.float32), axis=-1, keepdims=True)
    inv = pl.reciprocal(l_sum, approx=True)                # EUP reciprocal
    p_n = (p * inv.astype(p.dtype)).astype(jnp.bfloat16)   # normalize before PV
    # V @ P^T directly yields the lane-dense (Gb, hd, Lp) output layout, so the
    # store and writeback DMA are full-lane (no masked vst.msk on tiny hd).
    o_t = jnp.einsum("gdm,glm->gdl", v, p_n, preferred_element_type=jnp.float32)
    o_ref[...] = o_t.astype(o_ref.dtype)


def _pick_pack(g, l):
    # Pack several windows along L (up to 128 lanes); any divisor of g works
    # because the block-diagonal mask keeps packed windows independent.
    max_p = max(1, 128 // l)
    for p in range(min(max_p, g), 0, -1):
        if g % p == 0:
            return p
    return 1


def _pick_window_batch(gp, lp, hd):
    # Number of packed groups per grid step, sized against the per-chip VMEM
    # budget using (8,128)-padded shapes; prefer even grids >= 2 for v7x.
    lanes = _round_up(lp, 128)
    sub_l = _round_up(lp, 8)
    sub_d = _round_up(hd, 8)

    def fits(gb):
        scores = gb * sub_l * lanes * 12                  # s (f32) + p + p_n copies
        io = 4 * 2 * gb * sub_d * lanes * 4               # q,k,v,o double-buffered
        mask = sub_l * lanes * 4
        return scores + io + mask <= _TILE_BUDGET

    cands = [c for c in (512, 256, 128, 64, 32, 16, 8, 4, 2, 1)
             if c <= gp and fits(c)]
    for c in cands:
        if gp % c == 0 and (gp // c) >= 2 and (gp // c) % 2 == 0:
            return c
    for c in cands:
        if gp % c == 0 and (gp // c) >= 2:
            return c
    return cands[0] if cands else 1


def window_attention(q, k, v, scale):
    # q, k, v: (G, L, hd) -> (G, L, hd).
    g, l, hd = q.shape
    p = _pick_pack(g, l)
    lp = p * l
    gp = g // p

    def dense(t):
        # (G, L, hd) -> (Gp, hd, Lp): contiguous re-group then lane-dense layout.
        return jnp.transpose(t.reshape(gp, lp, hd), (0, 2, 1))

    qd, kd, vd = dense(q), dense(k), dense(v)
    gb = _pick_window_batch(gp, lp, hd)
    masked = p > 1
    kern = functools.partial(_window_attn_kernel, scale=scale,
                             exp_dtype=_EXP_DTYPE, masked=masked)
    blk = pl.BlockSpec((gb, hd, lp), lambda i: (i, 0, 0))
    in_specs = [blk, blk, blk]
    operands = [qd, kd, vd]
    if masked:
        wid = jnp.arange(lp) // l
        mask = (wid[:, None] == wid[None, :]).astype(jnp.float32)
        in_specs = [pl.BlockSpec((lp, lp), lambda i: (0, 0))] + in_specs
        operands = [mask] + operands
    od = pl.pallas_call(
        kern,
        out_shape=jax.ShapeDtypeStruct((gp, hd, lp), q.dtype),
        grid=(_cdiv(gp, gb),),
        in_specs=in_specs,
        out_specs=blk,
        compiler_params=pltpu.CompilerParams(
            dimension_semantics=("parallel",),
            vmem_limit_bytes=_VMEM_LIMIT),
    )(*operands)
    return jnp.transpose(od, (0, 2, 1)).reshape(g, l, hd)


# --------------------- bilinear resize (PyTorch align_corners=False) --------
# TODO(synk): F.interpolate's bilinear gather is plain JAX glue, not a Pallas
# kernel (data-dependent gather; left to XLA).

def _interp_indices(out_size, in_size):
    scale = in_size / out_size
    src = (jnp.arange(out_size, dtype=jnp.float32) + 0.5) * scale - 0.5
    src = jnp.maximum(src, 0.0)
    i0 = jnp.minimum(jnp.floor(src).astype(jnp.int32), in_size - 1)
    i1 = jnp.minimum(i0 + 1, in_size - 1)
    lam = src - i0.astype(jnp.float32)
    return i0, i1, lam


def bilinear_resize_nhwc(x, out_h, out_w):
    _, hin, win, _ = x.shape
    if (hin, win) == (out_h, out_w):
        return x
    y0, y1, ly = _interp_indices(out_h, hin)
    x0, x1, lx = _interp_indices(out_w, win)
    top = x[:, y0, :, :]
    bot = x[:, y1, :, :]
    tl, tr = top[:, :, x0, :], top[:, :, x1, :]
    bl, br = bot[:, :, x0, :], bot[:, :, x1, :]
    lx_b = lx[None, None, :, None]
    ly_b = ly[None, :, None, None]
    row0 = tl * (1.0 - lx_b) + tr * lx_b
    row1 = bl * (1.0 - lx_b) + br * lx_b
    return row0 * (1.0 - ly_b) + row1 * ly_b


# ------------------------------- full forward -------------------------------

WINDOW_SIZES = (2, 4, 8, 16, 32)


def change_guide_mul_window_attention(x, temp, params, num_heads=8):
    B, dim, H, W = x.shape
    assert dim % num_heads == 0
    hd = dim // num_heads
    scale = float(hd) ** (-0.5)
    n_pix = B * H * W

    # Work channels-last internally; only the module boundary is NCHW.
    x_nhwc = jnp.transpose(x, (0, 2, 3, 1))                  # (B, H, W, dim)
    x_flat = x_nhwc.reshape(n_pix, dim)

    # --- temp branch: interpolate, then the *folded* conv  v(conv_temp(.)) ---
    # conv_v(conv_temp(t)) == (W_v @ W_temp) t + W_v @ b_temp : one matmul.
    temp_nhwc = jnp.transpose(temp, (0, 2, 3, 1))            # (B, th, tw, 512)
    temp_nhwc = bilinear_resize_nhwc(temp_nhwc, H, W)
    w_q = params["w_v"] @ params["w_temp"]                   # (dim, 512)
    b_q = params["w_v"] @ params["b_temp"]                   # (dim,)
    q_flat = matmul_bias(temp_nhwc.reshape(n_pix, temp.shape[1]),
                         jnp.transpose(w_q, (1, 0)), b_q.reshape(1, dim))
    q = q_flat.reshape(B, H, W, num_heads, hd)               # (B, H, W, nh, hd)

    # --- h_qkv(x): two separate projections so K and V land contiguous in HBM
    # (no strided re-materialization of a fused (n_pix, 2*dim) activation). ---
    zero_b = jnp.zeros((1, dim), x.dtype)
    w_k = jnp.transpose(params["w_qkv"][:dim], (1, 0))       # (dim, dim)
    w_vv = jnp.transpose(params["w_qkv"][dim:], (1, 0))      # (dim, dim)
    k = matmul_bias(x_flat, w_k, zero_b).reshape(B, H, W, num_heads, hd)
    v = matmul_bias(x_flat, w_vv, zero_b).reshape(B, H, W, num_heads, hd)

    # TODO(synk): the window split/merge below is reshape/transpose glue left to
    # XLA; folding it into BlockSpec index_maps (head-major layout + (B,hg,wg)
    # grid) would remove the attention-adjacent HBM copies.
    attn_outputs = []
    remaining = num_heads
    for i, ws in enumerate(WINDOW_SIZES):
        if H < ws or W < ws:   # W-guard added (PyTorch would fail on W<ws<=H anyway)
            break
        hg, wg = H // ws, W // ws
        G = B * hg * wg
        L = ws * ws

        def to_windows(t, i=i, ws=ws, hg=hg, wg=wg, G=G, L=L):
            t = t[:, :, :, i, :]                             # (B, H, W, hd)
            t = t.reshape(B, hg, ws, wg, ws, hd)
            t = jnp.transpose(t, (0, 1, 3, 2, 4, 5))         # (B, hg, wg, ws, ws, hd)
            return t.reshape(G, L, hd)

        o = window_attention(to_windows(q), to_windows(k), to_windows(v), scale)
        o = o.reshape(B, hg, wg, ws, ws, hd)
        o = jnp.transpose(o, (0, 1, 3, 2, 4, 5)).reshape(B, H, W, hd)
        attn_outputs.append(o)
        remaining -= 1

    if remaining > 0:
        start = num_heads - remaining

        def to_rows(t):
            t = t[:, :, :, start:, :]                        # (B, H, W, rem, hd)
            t = jnp.transpose(t, (0, 3, 1, 2, 4))            # (B, rem, H, W, hd)
            return t.reshape(B * remaining * H, W, hd)

        o = window_attention(to_rows(q), to_rows(k), to_rows(v), scale)
        o = o.reshape(B, remaining, H, W, hd)
        # PyTorch does .reshape(B, H, W, -1) on the contiguous (B, rem, H, W, hd)
        # tensor (raw row-major reinterpretation); jnp.reshape matches it.
        attn_outputs.append(o.reshape(B, H, W, remaining * hd))

    xa = jnp.concatenate(attn_outputs, axis=-1)              # (B, H, W, dim)
    # Projection matmul with bias + residual add fused inside the kernel.
    y_flat = matmul_bias(xa.reshape(n_pix, dim),
                         jnp.transpose(params["w_proj"], (1, 0)),
                         params["b_proj"].reshape(1, dim),
                         residual=x_flat)
    return jnp.transpose(y_flat.reshape(B, H, W, dim), (0, 3, 1, 2))


# ------------------------------ parameter init -------------------------------

def init_params(key, dim):
    ks = jax.random.split(key, 6)

    def w(k, cout, cin):
        return jax.random.normal(k, (cout, cin), jnp.float32) * (1.0 / (cin ** 0.5))

    return {
        "w_qkv": w(ks[0], 2 * dim, dim),            # h_qkv (no bias)
        "w_v": w(ks[1], dim, dim),                  # v     (no bias)
        "w_proj": w(ks[2], dim, dim),               # h_proj
        "b_proj": jax.random.normal(ks[3], (dim,), jnp.float32) * 0.01,
        "w_temp": w(ks[4], dim, 512),               # conv_temp (512 -> dim)
        "b_temp": jax.random.normal(ks[5], (dim,), jnp.float32) * 0.01,
    }


if __name__ == "__main__":
    B, dim, H, W = 2, 32, 16, 16
    num_heads = 8
    key = jax.random.PRNGKey(0)
    kx, kt, kp = jax.random.split(key, 3)
    x = jax.random.normal(kx, (B, dim, H, W), jnp.float32)
    temp = jax.random.normal(kt, (B, 512, 8, 8), jnp.float32)
    params = init_params(kp, dim)

    out = change_guide_mul_window_attention(x, temp, params, num_heads=num_heads)
    out = jax.block_until_ready(out)
    assert out.shape == (B, dim, H, W) and out.dtype == jnp.float32
    print("KERNEL_OK")
</pallas_src>

<mosaic_0001>
module attributes {stable_mosaic.version = 11 : i64} {
  func.func @_matmul_bias_kernel(%arg0: i32, %arg1: memref<256x512xf32, #tpu.memory_space<vmem>>, %arg2: memref<512x32xf32, #tpu.memory_space<vmem>>, %arg3: memref<1x32xf32, #tpu.memory_space<vmem>>, %arg4: memref<256x32xf32, #tpu.memory_space<vmem>>) attributes {dimension_semantics = [#tpu.dimension_semantics<parallel>], iteration_bounds = array<i64: 2>, scalar_prefetch = 0 : i64, scratch_operands = 0 : i64, tpu.core_type = #tpu.core_type<tc>, window_params = [{transform_indices = @transform_0, window_bounds = array<i64: 256, 512>}, {pipeline_mode = #tpu.pipeline_mode<synchronous>, transform_indices = @transform_1, window_bounds = array<i64: 512, 32>}, {pipeline_mode = #tpu.pipeline_mode<synchronous>, transform_indices = @transform_2, window_bounds = array<i64: 1, 32>}, {transform_indices = @transform_3, window_bounds = array<i64: 256, 32>}]} {
    %c0 = arith.constant 0 : index
    %c0_0 = arith.constant 0 : index
    %0 = vector.load %arg1[%c0, %c0_0] : memref<256x512xf32, #tpu.memory_space<vmem>>, vector<256x512xf32>
    %c0_1 = arith.constant 0 : index
    %c0_2 = arith.constant 0 : index
    %1 = vector.load %arg2[%c0_1, %c0_2] : memref<512x32xf32, #tpu.memory_space<vmem>>, vector<512x32xf32>
    %cst = arith.constant dense<0.000000e+00> : vector<256x32xf32>
    %2 = tpu.matmul %0, %1, %cst {dimension_numbers = #tpu.dot_dimension_numbers<[1], [0], [0], [1], [0, 0, 1, 1], [], []>} : vector<256x512xf32>, vector<512x32xf32>, vector<256x32xf32> -> vector<256x32xf32>
    %c0_3 = arith.constant 0 : index
    %c0_4 = arith.constant 0 : index
    %3 = vector.load %arg3[%c0_3, %c0_4] : memref<1x32xf32, #tpu.memory_space<vmem>>, vector<1x32xf32>
    %4 = vector.broadcast %3 : vector<1x32xf32> to vector<256x32xf32>
    %5 = arith.addf %2, %4 : vector<256x32xf32>
    %c0_5 = arith.constant 0 : index
    %c0_6 = arith.constant 0 : index
    %6 = vector.load %arg4[%c0_5, %c0_6] : memref<256x32xf32, #tpu.memory_space<vmem>>, vector<256x32xf32>
    tpu.vector_store %arg4[%c0_5, %c0_6], %5 {strides = array<i32>} : memref<256x32xf32, #tpu.memory_space<vmem>>, vector<256x32xf32>,
    return
  }
  func.func @transform_0(%arg0: i32) -> (i32, i32) {
    %c0_i32 = arith.constant 0 : i32
    %c0_i32_0 = arith.constant 0 : i32
    return %arg0, %c0_i32 : i32, i32
  }
  func.func @transform_1(%arg0: i32) -> (i32, i32) {
    %c0_i32 = arith.constant 0 : i32
    %c0_i32_0 = arith.constant 0 : i32
    %c0_i32_1 = arith.constant 0 : i32
    return %c0_i32, %c0_i32_0 : i32, i32
  }
  func.func @transform_2(%arg0: i32) -> (i32, i32) {
    %c0_i32 = arith.constant 0 : i32
    %c0_i32_0 = arith.constant 0 : i32
    %c0_i32_1 = arith.constant 0 : i32
    return %c0_i32, %c0_i32_0 : i32, i32
  }
  func.func @transform_3(%arg0: i32) -> (i32, i32) {
    %c0_i32 = arith.constant 0 : i32
    %c0_i32_0 = arith.constant 0 : i32
    return %arg0, %c0_i32 : i32, i32
  }
}

</mosaic_0001>

<bundles_post_ra>
// kernel: tpu_custom_call.1
= control target key start
LH: loop header
LB: loop body
LE: loop exit
PB: predicated region body
PF: predicated region fallthrough
CT: control target
= control target key end

     0   :  { %8 = vsyncpa [#allocation3], 0  ;;  %s1679_s0 = inlined_call_operand.hbm [shape: f32[512,512], index: 0, kind: input, shape index: {}]   ;;  %s1680_s1 = inlined_call_operand.vmem [shape: f32[512,32], index: 1, kind: input, shape index: {}]   ;;  %s1681_s2 = inlined_call_operand.vmem [shape: f32[1,32], index: 2, kind: input, shape index: {}]   ;;  %s1682_s3 = inlined_call_operand.vmem [shape: f32[512,32], index: 3, kind: output, shape index: {}]  }
   0x1   :  { %10 = vsyncpa [#allocation3 + $0x1], 0  ;;  %s1090_s12 = smov 0   ;;  %s1092_s13 = smov 0  }
   0x2   :  { %s1094_s14 = smov 0   ;;  %s1096_s15 = smov 0  }
   0x3 LB: > { %s943_s16 = sadd.s32 4294967295, %s1064_s15   ;;  %s1110_s17 = sadd.s32 1, %s1064_s15   ;;  %s1064_s15 = sphi %s1096_s15, %s1691_s15   ;;  %s1060_s14 = sphi %s1094_s14, %s1690_s14   ;;  %s1056_s13 = sphi %s1092_s13, %s1689_s13   ;;  %s1052_s12 = sphi %s1090_s12, %s1688_s12  }
   0x4   : > { %s20_s18 = ssub.s32 %s1064_s15, %s1110_s17  ;;  %s23_s19 = sadd.s32 1, %s1060_s14 }
   0x5   : > { %p21_p0 = scmp.eq.s32.totalorder %s20_s18, 0  ;;  %p30_p1 = scmp.ne.s32.totalorder %s1060_s14, %s1056_s13 }
   0x6   : > { %p31_p2 = scmp.eq.s32.totalorder %s1064_s15, 0  ;;  %p36_p3 = scmp.ne.s32.totalorder %s1056_s13, %s1052_s12 }
   0x7   : > { %s1120_s20 = scalar_select %p21_p0, %s1060_s14, %s23_s19  }
   0x8   : > { %p32_p4 = por %p31_p2, %p30_p1  ;;  %p37_p5 = scmp.eq.s32.totalorder %s943_s16, 0 }
   0x9   : > { %p966_p6 = scmp.lt.s32.totalorder %s1064_s15, 2  ;;  %s134_s22 = sand.u32 1, %s1060_s14  }
   0xa   : > { %p1125_p7 = por %p37_p5, %p36_p3  ;;  %s947_s23 = sshll.u32 %s134_s22, 10 }
   0xb   : > { %s959_s24 = sshll.u32 %s1064_s15, 14  ;;  %s138_s28 = scalar_lea.vmem [#allocation2], %s947_s23 }
   0xc   : > { %s1684_s21 = scalar_select %p1125_p7, 1, 0 }
   0xd   : > { %s1134_s27 = scalar_lea.hbm %s1679_s0, %s959_s24  ;;  %s146_s29 = sshll.u32 %s138_s28, 4  ;;  %s1136_s29 = int_to_ptr.vmem [resolvable:$true] %s146_s29 }
   0xe   : > { %p1138_p8 = pnand %p966_p6, %p32_p4  ;;  %s1143_s4 = scalar_lea.sflag [#allocation3], %s134_s22 }
   0xf   : > { %s1002_s5 = scalar_lea.hbm %s1134_s27, 16384  ;;  %s1007_s8 = scalar_lea.hbm %s1679_s0, 32768 }
  0x10   : > { %p1003_p10 = scmp.ne.s32.totalorder %s1134_s27, %s1002_s5  ;;  %p1004_p11 = pneg %p1138_p8 }
  0x11   : > { %p1008_p0 = scmp.lt.s32.totalorder %s1134_s27, %s1679_s0  ;;  %p1009_p1 = scmp.lt.s32.totalorder %s1007_s8, %s1002_s5 }
  0x12   : > { %p1005_p12 = pnand %p1004_p11, %p1003_p10 }
  0x13   : > { %p1010_p2 = por %p1009_p1, %p1008_p0 }
  0x14   : > { %p1006_p13 = pneg %p1005_p12 }
  0x16   : > { %p1011_p3 = pnand %p1010_p2, %p1006_p13 }
  0x18   : > { %1014 = shalt.err (!%p1011_p3)
}
  0x19   : > { %s1015_s11 = scalar_lea.vmem %s1136_s29, 16384  ;;  %s1066_s12 = smov [#allocation2]  }
  0x1a   : > { %p1016_p4 = scmp.ne.s32.totalorder %s1136_s29, %s1015_s11  ;;  %s1020_s18 = sshll.u32 %s1066_s12, 4  ;;  %s1021_s18 = int_to_ptr.vmem [resolvable:$false] %s1020_s18 }
  0x1b   : > { %s1022_s19 = scalar_lea.vmem %s1021_s18, 32768  ;;  %p1023_p10 = scmp.lt.s32.totalorder %s1136_s29, %s1021_s18 }
  0x1c   : > { %p1018_p5 = pnand %p1016_p4, %p1004_p11  ;;  %p1024_p12 = scmp.lt.s32.totalorder %s1022_s19, %s1015_s11 }
  0x1e   : > { %p1019_p6 = pneg %p1018_p5  ;;  %p1025_p9 = por %p1024_p12, %p1023_p10 }
  0x20   : > { %p1026_p7 = pnand %p1025_p9, %p1019_p6 }
  0x22   : > { %1029 = shalt.err (!%p1026_p7)
}
  0x23   : > { %s1067_s22 = smov 512   ;;  %s1068_s23 = smov 32  }
  0x24   : > { %965 = dma.hbm_to_vmem [thread:$0]  (!%p1138_p8), %s1134_s27, 16384, %s1136_s29, %s1143_s4, %s1067_s22, %s1067_s22, %s1068_s23  }
  0x25   : > { %p154_p11 = scmp.lt.s32.totalorder %s1064_s15, 3  ;;  %p1686_p13 = scmp.ge.s32.totalorder %s1064_s15, 1 }
  0x27   : > { %p155_p0 = pnand %p1686_p13, %p154_p11 }
  0x28   : > { %s160_s24 = sand.u32 (!%p155_p0), 1, %s1056_s13   ;;  %p1687_p7 = scmp.ne.s32.totalorder (!%p155_p0), %s1684_s21, 0 }
  0x29   : > { %158 = sbr.rel (%p155_p0) target bundleno = 435 (0x1b3), region = 32  ;;  %s952_s25 = sshll.u32 (!%p155_p0), %s160_s24, 10 }
  0x2a   : > { %s161_s26 = scalar_lea.sflag (!%p155_p0), [#allocation3], %s160_s24  ;;  %s1168_s28 = scalar_lea.vmem (!%p155_p0), [#allocation2], %s952_s25 }
  0x2e   : > { %1047 = dma.done.wait (%p1687_p7), %s161_s26, 16384  }
  0x2f   : > { %1049 = vsyncadd (%p1687_p7), %s161_s26, 4294950912  ;;  %v1069_v0 = vmov 0.0   ;;  %v337_v1 = vld [vmem:[%s1680_s1 + $0x78] sm:$0xff]  ;;  %v336_v3 = vld [vmem:[%s1680_s1 + $0x70] sm:$0xff]  ;;  %s953_s8 = sshll.u32 %s943_s16, 5  ;;  %vm843_vm0 = vcmask 261120  }
  0x30   : > { %393 = vmatprep.subr.mxu0 %v1069_v0  ;;  %618 = vmatprep.subr.mxu1 %v1069_v0  ;;  %v369_v2 = vld [vmem:[%s1680_s1 + $0x178] sm:$0xff]  ;;  %v368_v4 = vld [vmem:[%s1680_s1 + $0x170] sm:$0xff]  ;;  %v335_v5 = vld [vmem:[%s1680_s1 + $0x68] sm:$0xff]  ;;  %p189_p8 = scmp.lt.s32.totalorder %s953_s8, 63 }
  0x31   : > { %394 = vmatpush1.msra.mxu0 %v337_v1  ;;  %619 = vmatpush1.msra.mxu1 %v369_v2  ;;  %v367_v6 = vld [vmem:[%s1680_s1 + $0x168] sm:$0xff]  ;;  %v334_v7 = vld [vmem:[%s1680_s1 + $0x60] sm:$0xff]  ;;  %v333_v9 = vld [vmem:[%s1680_s1 + $0x58] sm:$0xff] }
  0x32   : > { %395 = vmatprep.subr.mxu0 %v1069_v0  ;;  %620 = vmatprep.subr.mxu1 %v1069_v0  ;;  %v366_v8 = vld [vmem:[%s1680_s1 + $0x160] sm:$0xff]  ;;  %v365_v10 = vld [vmem:[%s1680_s1 + $0x158] sm:$0xff]  ;;  %v332_v11 = vld [vmem:[%s1680_s1 + $0x50] sm:$0xff]  ;;  %s1693_s8 = smov (!%p189_p8, %s953_s8), 63 }
  0x33   : > { %396 = vmatpush1.msra.mxu0 %v336_v3  ;;  %621 = vmatpush1.msra.mxu1 %v368_v4  ;;  %v364_v12 = vld [vmem:[%s1680_s1 + $0x150] sm:$0xff]  ;;  %v331_v13 = vld [vmem:[%s1680_s1 + $0x48] sm:$0xff]  ;;  %v330_v15 = vld [vmem:[%s1680_s1 + $0x40] sm:$0xff]  ;;  %s954_s11 = sshll.u32 %s1693_s8, 3 }
  0x34   : > { %397 = vmatprep.subr.mxu0 %v1069_v0  ;;  %622 = vmatprep.subr.mxu1 %v1069_v0  ;;  %v363_v14 = vld [vmem:[%s1680_s1 + $0x148] sm:$0xff]  ;;  %v362_v16 = vld [vmem:[%s1680_s1 + $0x140] sm:$0xff]  ;;  %v329_v17 = vld [vmem:[%s1680_s1 + $0x38] sm:$0xff] }
  0x35   : > { %398 = vmatpush1.msra.mxu0 %v335_v5  ;;  %623 = vmatpush1.msra.mxu1 %v367_v6  ;;  %v361_v18 = vld [vmem:[%s1680_s1 + $0x138] sm:$0xff]  ;;  %v328_v19 = vld [vmem:[%s1680_s1 + $0x30] sm:$0xff]  ;;  %v327_v21 = vld [vmem:[%s1680_s1 + $0x28] sm:$0xff] }
  0x36   : > { %399 = vmatprep.subr.mxu0 %v1069_v0  ;;  %624 = vmatprep.subr.mxu1 %v1069_v0  ;;  %v360_v20 = vld [vmem:[%s1680_s1 + $0x130] sm:$0xff]  ;;  %v359_v22 = vld [vmem:[%s1680_s1 + $0x128] sm:$0xff]  ;;  %v326_v23 = vld [vmem:[%s1680_s1 + $0x20] sm:$0xff] }
  0x37   : > { %400 = vmatpush1.msra.mxu0 %v334_v7  ;;  %625 = vmatpush1.msra.mxu1 %v366_v8  ;;  %v358_v24 = vld [vmem:[%s1680_s1 + $0x120] sm:$0xff]  ;;  %v325_v25 = vld [vmem:[%s1680_s1 + $0x18] sm:$0xff]  ;;  %v324_v27 = vld [vmem:[%s1680_s1 + $0x10] sm:$0xff] }
  0x38   : > { %401 = vmatprep.subr.mxu0 %v1069_v0  ;;  %626 = vmatprep.subr.mxu1 %v1069_v0  ;;  %v357_v26 = vld [vmem:[%s1680_s1 + $0x118] sm:$0xff]  ;;  %v356_v28 = vld [vmem:[%s1680_s1 + $0x110] sm:$0xff]  ;;  %v323_v29 = vld [vmem:[%s1680_s1 + $0x8] sm:$0xff] }
  0x39   : > { %402 = vmatpush1.msra.mxu0 %v333_v9  ;;  %627 = vmatpush1.msra.mxu1 %v365_v10  ;;  %v355_v30 = vld [vmem:[%s1680_s1 + $0x108] sm:$0xff]  ;;  %v322_v31 = vld [vmem:[%s1680_s1] sm:$0xff]  ;;  %v353_v33 = vld [vmem:[%s1680_s1 + $0xf8] sm:$0xff] }
  0x3a   : > { %403 = vmatprep.subr.mxu0 %v1069_v0  ;;  %628 = vmatprep.subr.mxu1 %v1069_v0  ;;  %v354_v32 = vld [vmem:[%s1680_s1 + $0x100] sm:$0xff]  ;;  %v385_v34 = vld [vmem:[%s1680_s1 + $0x1f8] sm:$0xff]  ;;  %v352_v35 = vld [vmem:[%s1680_s1 + $0xf0] sm:$0xff] }
  0x3b   : > { %404 = vmatpush1.msra.mxu0 %v332_v11  ;;  %629 = vmatpush1.msra.mxu1 %v364_v12  ;;  %v384_v36 = vld [vmem:[%s1680_s1 + $0x1f0] sm:$0xff]  ;;  %v351_v37 = vld [vmem:[%s1680_s1 + $0xe8] sm:$0xff]  ;;  %v350_v39 = vld [vmem:[%s1680_s1 + $0xe0] sm:$0xff] }
  0x3c   : > { %405 = vmatprep.subr.mxu0 %v1069_v0  ;;  %630 = vmatprep.subr.mxu1 %v1069_v0  ;;  %v383_v38 = vld [vmem:[%s1680_s1 + $0x1e8] sm:$0xff]  ;;  %v382_v40 = vld [vmem:[%s1680_s1 + $0x1e0] sm:$0xff]  ;;  %v349_v41 = vld [vmem:[%s1680_s1 + $0xd8] sm:$0xff] }
  0x3d   : > { %406 = vmatpush1.msra.mxu0 %v331_v13  ;;  %631 = vmatpush1.msra.mxu1 %v363_v14  ;;  %v381_v42 = vld [vmem:[%s1680_s1 + $0x1d8] sm:$0xff]  ;;  %v348_v43 = vld [vmem:[%s1680_s1 + $0xd0] sm:$0xff]  ;;  %v347_v45 = vld [vmem:[%s1680_s1 + $0xc8] sm:$0xff] }
  0x3e   : > { %407 = vmatprep.subr.mxu0 %v1069_v0  ;;  %632 = vmatprep.subr.mxu1 %v1069_v0  ;;  %v380_v44 = vld [vmem:[%s1680_s1 + $0x1d0] sm:$0xff]  ;;  %v379_v46 = vld [vmem:[%s1680_s1 + $0x1c8] sm:$0xff]  ;;  %v346_v47 = vld [vmem:[%s1680_s1 + $0xc0] sm:$0xff] }
  0x3f   : > { %408 = vmatpush1.msra.mxu0 %v330_v15  ;;  %633 = vmatpush1.msra.mxu1 %v362_v16  ;;  %v378_v48 = vld [vmem:[%s1680_s1 + $0x1c0] sm:$0xff]  ;;  %v345_v49 = vld [vmem:[%s1680_s1 + $0xb8] sm:$0xff]  ;;  %v344_v51 = vld [vmem:[%s1680_s1 + $0xb0] sm:$0xff] }
  0x40   : > { %409 = vmatprep.subr.mxu0 %v1069_v0  ;;  %634 = vmatprep.subr.mxu1 %v1069_v0  ;;  %v377_v50 = vld [vmem:[%s1680_s1 + $0x1b8] sm:$0xff]  ;;  %v376_v52 = vld [vmem:[%s1680_s1 + $0x1b0] sm:$0xff]  ;;  %v343_v53 = vld [vmem:[%s1680_s1 + $0xa8] sm:$0xff] }
  0x41   : > { %410 = vmatpush1.msra.mxu0 %v329_v17  ;;  %635 = vmatpush1.msra.mxu1 %v361_v18  ;;  %v375_v54 = vld [vmem:[%s1680_s1 + $0x1a8] sm:$0xff]  ;;  %v342_v55 = vld [vmem:[%s1680_s1 + $0xa0] sm:$0xff]  ;;  %v341_v57 = vld [vmem:[%s1680_s1 + $0x98] sm:$0xff] }
  0x42   : > { %411 = vmatprep.subr.mxu0 %v1069_v0  ;;  %636 = vmatprep.subr.mxu1 %v1069_v0  ;;  %v374_v56 = vld [vmem:[%s1680_s1 + $0x1a0] sm:$0xff]  ;;  %v373_v58 = vld [vmem:[%s1680_s1 + $0x198] sm:$0xff]  ;;  %v340_v59 = vld [vmem:[%s1680_s1 + $0x90] sm:$0xff] }
  0x43   : > { %412 = vmatpush1.msra.mxu0 %v328_v19  ;;  %637 = vmatpush1.msra.mxu1 %v360_v20  ;;  %v372_v60 = vld [vmem:[%s1680_s1 + $0x190] sm:$0xff]  ;;  %v339_v61 = vld [vmem:[%s1680_s1 + $0x88] sm:$0xff]  ;;  %v338_v63 = vld [vmem:[%s1680_s1 + $0x80] sm:$0xff] }
  0x44   : > { %413 = vmatprep.subr.mxu0 %v1069_v0  ;;  %638 = vmatprep.subr.mxu1 %v1069_v0  ;;  %v371_v62 = vld [vmem:[%s1680_s1 + $0x188] sm:$0xff]  ;;  %v370_v2 = vld [vmem:[%s1680_s1 + $0x180] sm:$0xff]  ;;  %v197_v3 = vld [vmem:[%s1168_s28 + $0x18] sm:$0xff] }
  0x45   : > { %414 = vmatpush1.msra.mxu0 %v327_v21  ;;  %639 = vmatpush1.msra.mxu1 %v359_v22  ;;  %v195_v1 = vld [vmem:[%s1168_s28 + $0x8] sm:$0xff]  ;;  %v194_v4 = vld [vmem:[%s1168_s28] sm:$0xff]  ;;  %v196_v5 = vld [vmem:[%s1168_s28 + $0x10] sm:$0xff] }
  0x46   : > { %415 = vmatprep.subr.mxu0 %v1069_v0  ;;  %640 = vmatprep.subr.mxu1 %v1069_v0  ;;  %v199_v6 = vld [vmem:[%s1168_s28 + $0x28] sm:$0xff]  ;;  %v201_v7 = vld [vmem:[%s1168_s28 + $0x38] sm:$0xff]  ;;  %v198_v8 = vld [vmem:[%s1168_s28 + $0x20] sm:$0xff] }
  0x47   : > { %416 = vmatpush1.msra.mxu0 %v326_v23  ;;  %641 = vmatpush1.msra.mxu1 %v358_v24  ;;  %v203_v9 = vld [vmem:[%s1168_s28 + $0x48] sm:$0xff]  ;;  %v205_v10 = vld [vmem:[%s1168_s28 + $0x58] sm:$0xff]  ;;  %v202_v11 = vld [vmem:[%s1168_s28 + $0x40] sm:$0xff] }
  0x48   : > { %417 = vmatprep.subr.mxu0 %v1069_v0  ;;  %642 = vmatprep.subr.mxu1 %v1069_v0  ;;  %v204_v12 = vld [vmem:[%s1168_s28 + $0x50] sm:$0xff]  ;;  %v207_v13 = vld [vmem:[%s1168_s28 + $0x68] sm:$0xff]  ;;  %v209_v14 = vld [vmem:[%s1168_s28 + $0x78] sm:$0xff] }
  0x49   : > { %418 = vmatpush1.msra.mxu0 %v325_v25  ;;  %643 = vmatpush1.msra.mxu1 %v357_v26  ;;  %v206_v15 = vld [vmem:[%s1168_s28 + $0x60] sm:$0xff]  ;;  %v208_v16 = vld [vmem:[%s1168_s28 + $0x70] sm:$0xff]  ;;  %v211_v17 = vld [vmem:[%s1168_s28 + $0x88] sm:$0xff] }
  0x4a   : > { %419 = vmatprep.subr.mxu0 %v1069_v0  ;;  %644 = vmatprep.subr.mxu1 %v1069_v0  ;;  %v213_v18 = vld [vmem:[%s1168_s28 + $0x98] sm:$0xff]  ;;  %v210_v19 = vld [vmem:[%s1168_s28 + $0x80] sm:$0xff]  ;;  %v212_v20 = vld [vmem:[%s1168_s28 + $0x90] sm:$0xff] }
  0x4b   : > { %420 = vmatpush1.msra.mxu0 %v324_v27  ;;  %645 = vmatpush1.msra.mxu1 %v356_v28  ;;  %v215_v21 = vld [vmem:[%s1168_s28 + $0xa8] sm:$0xff]  ;;  %v217_v22 = vld [vmem:[%s1168_s28 + $0xb8] sm:$0xff]  ;;  %v214_v23 = vld [vmem:[%s1168_s28 + $0xa0] sm:$0xff] }
  0x4c   : > { %421 = vmatprep.subr.mxu0 %v1069_v0  ;;  %646 = vmatprep.subr.mxu1 %v1069_v0  ;;  %v216_v24 = vld [vmem:[%s1168_s28 + $0xb0] sm:$0xff]  ;;  %v219_v25 = vld [vmem:[%s1168_s28 + $0xc8] sm:$0xff]  ;;  %v221_v26 = vld [vmem:[%s1168_s28 + $0xd8] sm:$0xff] }
  0x4d   : > { %422 = vmatpush1.msra.mxu0 %v323_v29  ;;  %647 = vmatpush1.msra.mxu1 %v355_v30  ;;  %v218_v27 = vld [vmem:[%s1168_s28 + $0xc0] sm:$0xff]  ;;  %v220_v28 = vld [vmem:[%s1168_s28 + $0xd0] sm:$0xff]  ;;  %v223_v29 = vld [vmem:[%s1168_s28 + $0xe8] sm:$0xff] }
  0x4e   : > { %423 = vmatprep.subr.mxu0 %v1069_v0  ;;  %648 = vmatprep.subr.mxu1 %v1069_v0  ;;  %v225_v30 = vld [vmem:[%s1168_s28 + $0xf8] sm:$0xff] }
  0x4f   : > { %424 = vmatpush1.msra.mxu0 %v322_v31  ;;  %649 = vmatpush1.msra.mxu1 %v354_v32  ;;  %v222_v31 = vld [vmem:[%s1168_s28 + $0xe0] sm:$0xff]  ;;  %v224_v32 = vld [vmem:[%s1168_s28 + $0xf0] sm:$0xff] }
  0x50   : > { %425 = vmatprep.subr.mxu0 %v1069_v0  ;;  %650 = vmatprep.subr.mxu1 %v1069_v0 }
  0x51   : > { %426 = vmatpush2.msra.mxu0 %v353_v33  ;;  %651 = vmatpush2.msra.mxu1 %v385_v34  ;;  %v227_v33 = vld [vmem:[%s1168_s28 + $0x108] sm:$0xff]  ;;  %v229_v34 = vld [vmem:[%s1168_s28 + $0x118] sm:$0xff] }
  0x52   : > { %427 = vmatprep.subr.mxu0 %v1069_v0  ;;  %652 = vmatprep.subr.mxu1 %v1069_v0 }
  0x53   : > { %428 = vmatpush2.msra.mxu0 %v352_v35  ;;  %653 = vmatpush2.msra.mxu1 %v384_v36  ;;  %v226_v35 = vld [vmem:[%s1168_s28 + $0x100] sm:$0xff]  ;;  %v228_v36 = vld [vmem:[%s1168_s28 + $0x110] sm:$0xff] }
  0x54   : > { %429 = vmatprep.subr.mxu0 %v1069_v0  ;;  %654 = vmatprep.subr.mxu1 %v1069_v0 }
  0x55   : > { %430 = vmatpush2.msra.mxu0 %v351_v37  ;;  %655 = vmatpush2.msra.mxu1 %v383_v38  ;;  %v231_v37 = vld [vmem:[%s1168_s28 + $0x128] sm:$0xff]  ;;  %v233_v38 = vld [vmem:[%s1168_s28 + $0x138] sm:$0xff] }
  0x56   : > { %431 = vmatprep.subr.mxu0 %v1069_v0  ;;  %656 = vmatprep.subr.mxu1 %v1069_v0 }
  0x57   : > { %432 = vmatpush2.msra.mxu0 %v350_v39  ;;  %657 = vmatpush2.msra.mxu1 %v382_v40  ;;  %v230_v39 = vld [vmem:[%s1168_s28 + $0x120] sm:$0xff]  ;;  %v232_v40 = vld [vmem:[%s1168_s28 + $0x130] sm:$0xff] }
  0x58   : > { %433 = vmatprep.subr.mxu0 %v1069_v0  ;;  %658 = vmatprep.subr.mxu1 %v1069_v0 }
  0x59   : > { %434 = vmatpush2.msra.mxu0 %v349_v41  ;;  %659 = vmatpush2.msra.mxu1 %v381_v42  ;;  %v235_v41 = vld [vmem:[%s1168_s28 + $0x148] sm:$0xff]  ;;  %v237_v42 = vld [vmem:[%s1168_s28 + $0x158] sm:$0xff] }
  0x5a   : > { %435 = vmatprep.subr.mxu0 %v1069_v0  ;;  %660 = vmatprep.subr.mxu1 %v1069_v0 }
  0x5b   : > { %436 = vmatpush2.msra.mxu0 %v348_v43  ;;  %661 = vmatpush2.msra.mxu1 %v380_v44  ;;  %v234_v43 = vld [vmem:[%s1168_s28 + $0x140] sm:$0xff]  ;;  %v236_v44 = vld [vmem:[%s1168_s28 + $0x150] sm:$0xff] }
  0x5c   : > { %437 = vmatprep.subr.mxu0 %v1069_v0  ;;  %662 = vmatprep.subr.mxu1 %v1069_v0 }
  0x5d   : > { %438 = vmatpush2.msra.mxu0 %v347_v45  ;;  %663 = vmatpush2.msra.mxu1 %v379_v46  ;;  %v239_v45 = vld [vmem:[%s1168_s28 + $0x168] sm:$0xff]  ;;  %v241_v46 = vld [vmem:[%s1168_s28 + $0x178] sm:$0xff] }
  0x5e   : > { %439 = vmatprep.subr.mxu0 %v1069_v0  ;;  %664 = vmatprep.subr.mxu1 %v1069_v0 }
  0x5f   : > { %440 = vmatpush2.msra.mxu0 %v346_v47  ;;  %665 = vmatpush2.msra.mxu1 %v378_v48  ;;  %v238_v47 = vld [vmem:[%s1168_s28 + $0x160] sm:$0xff]  ;;  %v240_v48 = vld [vmem:[%s1168_s28 + $0x170] sm:$0xff] }
  0x60   : > { %441 = vmatprep.subr.mxu0 %v1069_v0  ;;  %666 = vmatprep.subr.mxu1 %v1069_v0 }
  0x61   : > { %442 = vmatpush2.msra.mxu0 %v345_v49  ;;  %667 = vmatpush2.msra.mxu1 %v377_v50  ;;  %v243_v49 = vld [vmem:[%s1168_s28 + $0x188] sm:$0xff]  ;;  %v245_v50 = vld [vmem:[%s1168_s28 + $0x198] sm:$0xff] }
  0x62   : > { %443 = vmatprep.subr.mxu0 %v1069_v0  ;;  %668 = vmatprep.subr.mxu1 %v1069_v0 }
  0x63   : > { %444 = vmatpush2.msra.mxu0 %v344_v51  ;;  %669 = vmatpush2.msra.mxu1 %v376_v52  ;;  %v242_v51 = vld [vmem:[%s1168_s28 + $0x180] sm:$0xff]  ;;  %v244_v52 = vld [vmem:[%s1168_s28 + $0x190] sm:$0xff] }
  0x64   : > { %445 = vmatprep.subr.mxu0 %v1069_v0  ;;  %670 = vmatprep.subr.mxu1 %v1069_v0 }
  0x65   : > { %446 = vmatpush2.msra.mxu0 %v343_v53  ;;  %671 = vmatpush2.msra.mxu1 %v375_v54  ;;  %v247_v53 = vld [vmem:[%s1168_s28 + $0x1a8] sm:$0xff]  ;;  %v249_v54 = vld [vmem:[%s1168_s28 + $0x1b8] sm:$0xff] }
  0x66   : > { %447 = vmatprep.subr.mxu0 %v1069_v0  ;;  %672 = vmatprep.subr.mxu1 %v1069_v0 }
  0x67   : > { %448 = vmatpush2.msra.mxu0 %v342_v55  ;;  %673 = vmatpush2.msra.mxu1 %v374_v56  ;;  %v246_v55 = vld [vmem:[%s1168_s28 + $0x1a0] sm:$0xff]  ;;  %v248_v56 = vld [vmem:[%s1168_s28 + $0x1b0] sm:$0xff] }
  0x68   : > { %449 = vmatprep.subr.mxu0 %v1069_v0  ;;  %674 = vmatprep.subr.mxu1 %v1069_v0 }
  0x69   : > { %450 = vmatpush2.msra.mxu0 %v341_v57  ;;  %675 = vmatpush2.msra.mxu1 %v373_v58  ;;  %v251_v57 = vld [vmem:[%s1168_s28 + $0x1c8] sm:$0xff]  ;;  %v253_v58 = vld [vmem:[%s1168_s28 + $0x1d8] sm:$0xff] }
  0x6a   : > { %451 = vmatprep.subr.mxu0 %v1069_v0  ;;  %676 = vmatprep.subr.mxu1 %v1069_v0 }
  0x6b   : > { %452 = vmatpush2.msra.mxu0 %v340_v59  ;;  %677 = vmatpush2.msra.mxu1 %v372_v60  ;;  %v250_v59 = vld [vmem:[%s1168_s28 + $0x1c0] sm:$0xff]  ;;  %v252_v60 = vld [vmem:[%s1168_s28 + $0x1d0] sm:$0xff] }
  0x6c   : > { %453 = vmatprep.subr.mxu0 %v1069_v0  ;;  %678 = vmatprep.subr.mxu1 %v1069_v0 }
  0x6d   : > { %454 = vmatpush2.msra.mxu0 %v339_v61  ;;  %679 = vmatpush2.msra.mxu1 %v371_v62  ;;  %v255_v61 = vld [vmem:[%s1168_s28 + $0x1e8] sm:$0xff]  ;;  %v257_v62 = vld [vmem:[%s1168_s28 + $0x1f8] sm:$0xff] }
  0x6e   : > { %455 = vmatprep.subr.mxu0 %v1069_v0  ;;  %680 = vmatprep.subr.mxu1 %v1069_v0  ;;  %v200_v0 = vld [vmem:[%s1168_s28 + $0x30] sm:$0xff] }
  0x6f   : > { %456 = vmatpush2.msra.mxu0 %v338_v63  ;;  %457 = vmatprep.mubr.f32.mxu0 %v195_v1  ;;  %v254_v63 = vld [vmem:[%s1168_s28 + $0x1e0] sm:$0xff]  ;;  %v256_v1 = vld [vmem:[%s1168_s28 + $0x1f0] sm:$0xff] }
  0x70   : > { %681 = vmatpush2.msra.mxu1 %v370_v2  ;;  %682 = vmatprep.mubr.f32.mxu1 %v197_v3  ;;  %v259_v2 = vld [vmem:[%s1168_s28 + $0x208] sm:$0xff]  ;;  %v261_v3 = vld [vmem:[%s1168_s28 + $0x218] sm:$0xff] }
  0x71   : > { %458 = vmatmul.mubr.f32.vlgmr.msra.gmra.mxu0 %v194_v4  ;;  %683 = vmatmul.mubr.f32.vlgmr.msra.gmra.mxu1 %v196_v5  ;;  %v258_v4 = vld [vmem:[%s1168_s28 + $0x200] sm:$0xff]  ;;  %v260_v5 = vld [vmem:[%s1168_s28 + $0x210] sm:$0xff] }
  0x72   : > { %462 = vmatprep.mubr.f32.mxu0 %v199_v6  ;;  %687 = vmatprep.mubr.f32.mxu1 %v201_v7  ;;  %v263_v6 = vld [vmem:[%s1168_s28 + $0x228] sm:$0xff]  ;;  %v265_v7 = vld [vmem:[%s1168_s28 + $0x238] sm:$0xff] }
  0x75   : > { %463 = vmatmul.mubr.f32.gmra.mxu0 %v198_v8  ;;  %688 = vmatmul.mubr.f32.gmra.mxu1 %v200_v0  ;;  %v262_v8 = vld [vmem:[%s1168_s28 + $0x220] sm:$0xff]  ;;  %v264_v0 = vld [vmem:[%s1168_s28 + $0x230] sm:$0xff] }
  0x76   : > { %467 = vmatprep.mubr.f32.mxu0 %v203_v9  ;;  %692 = vmatprep.mubr.f32.mxu1 %v205_v10  ;;  %v267_v9 = vld [vmem:[%s1168_s28 + $0x248] sm:$0xff]  ;;  %v269_v10 = vld [vmem:[%s1168_s28 + $0x258] sm:$0xff] }
  0x79   : > { %468 = vmatmul.mubr.f32.gmra.mxu0 %v202_v11  ;;  %693 = vmatmul.mubr.f32.gmra.mxu1 %v204_v12  ;;  %v266_v11 = vld [vmem:[%s1168_s28 + $0x240] sm:$0xff]  ;;  %v268_v12 = vld [vmem:[%s1168_s28 + $0x250] sm:$0xff] }
  0x7a   : > { %472 = vmatprep.mubr.f32.mxu0 %v207_v13  ;;  %697 = vmatprep.mubr.f32.mxu1 %v209_v14  ;;  %v271_v13 = vld [vmem:[%s1168_s28 + $0x268] sm:$0xff]  ;;  %v273_v14 = vld [vmem:[%s1168_s28 + $0x278] sm:$0xff] }
  0x7d   : > { %473 = vmatmul.mubr.f32.gmra.mxu0 %v206_v15  ;;  %698 = vmatmul.mubr.f32.gmra.mxu1 %v208_v16  ;;  %v270_v15 = vld [vmem:[%s1168_s28 + $0x260] sm:$0xff]  ;;  %v272_v16 = vld [vmem:[%s1168_s28 + $0x270] sm:$0xff] }
  0x7e   : > { %477 = vmatprep.mubr.f32.mxu0 %v211_v17  ;;  %702 = vmatprep.mubr.f32.mxu1 %v213_v18  ;;  %v275_v17 = vld [vmem:[%s1168_s28 + $0x288] sm:$0xff]  ;;  %v277_v18 = vld [vmem:[%s1168_s28 + $0x298] sm:$0xff] }
  0x81   : > { %478 = vmatmul.mubr.f32.gmra.mxu0 %v210_v19  ;;  %703 = vmatmul.mubr.f32.gmra.mxu1 %v212_v20  ;;  %v274_v19 = vld [vmem:[%s1168_s28 + $0x280] sm:$0xff]  ;;  %v276_v20 = vld [vmem:[%s1168_s28 + $0x290] sm:$0xff] }
  0x82   : > { %482 = vmatprep.mubr.f32.mxu0 %v215_v21  ;;  %707 = vmatprep.mubr.f32.mxu1 %v217_v22  ;;  %v279_v21 = vld [vmem:[%s1168_s28 + $0x2a8] sm:$0xff]  ;;  %v281_v22 = vld [vmem:[%s1168_s28 + $0x2b8] sm:$0xff] }
  0x85   : > { %483 = vmatmul.mubr.f32.gmra.mxu0 %v214_v23  ;;  %708 = vmatmul.mubr.f32.gmra.mxu1 %v216_v24  ;;  %v278_v23 = vld [vmem:[%s1168_s28 + $0x2a0] sm:$0xff]  ;;  %v280_v24 = vld [vmem:[%s1168_s28 + $0x2b0] sm:$0xff] }
  0x86   : > { %487 = vmatprep.mubr.f32.mxu0 %v219_v25  ;;  %712 = vmatprep.mubr.f32.mxu1 %v221_v26  ;;  %v283_v25 = vld [vmem:[%s1168_s28 + $0x2c8] sm:$0xff]  ;;  %v285_v26 = vld [vmem:[%s1168_s28 + $0x2d8] sm:$0xff] }
  0x89   : > { %488 = vmatmul.mubr.f32.gmra.mxu0 %v218_v27  ;;  %713 = vmatmul.mubr.f32.gmra.mxu1 %v220_v28  ;;  %v282_v27 = vld [vmem:[%s1168_s28 + $0x2c0] sm:$0xff]  ;;  %v284_v28 = vld [vmem:[%s1168_s28 + $0x2d0] sm:$0xff] }
  0x8a   : > { %492 = vmatprep.mubr.f32.mxu0 %v223_v29  ;;  %717 = vmatprep.mubr.f32.mxu1 %v225_v30  ;;  %v287_v29 = vld [vmem:[%s1168_s28 + $0x2e8] sm:$0xff]  ;;  %v289_v30 = vld [vmem:[%s1168_s28 + $0x2f8] sm:$0xff] }
  0x8d   : > { %493 = vmatmul.mubr.f32.gmra.mxu0 %v222_v31  ;;  %718 = vmatmul.mubr.f32.gmra.mxu1 %v224_v32  ;;  %v286_v31 = vld [vmem:[%s1168_s28 + $0x2e0] sm:$0xff]  ;;  %v288_v32 = vld [vmem:[%s1168_s28 + $0x2f0] sm:$0xff] }
  0x8e   : > { %497 = vmatprep.mubr.f32.mxu0 %v227_v33  ;;  %722 = vmatprep.mubr.f32.mxu1 %v229_v34  ;;  %v291_v33 = vld [vmem:[%s1168_s28 + $0x308] sm:$0xff]  ;;  %v293_v34 = vld [vmem:[%s1168_s28 + $0x318] sm:$0xff] }
  0x91   : > { %498 = vmatmul.mubr.f32.gmra.mxu0 %v226_v35  ;;  %723 = vmatmul.mubr.f32.gmra.mxu1 %v228_v36  ;;  %v290_v35 = vld [vmem:[%s1168_s28 + $0x300] sm:$0xff]  ;;  %v292_v36 = vld [vmem:[%s1168_s28 + $0x310] sm:$0xff] }
  0x92   : > { %502 = vmatprep.mubr.f32.mxu0 %v231_v37  ;;  %727 = vmatprep.mubr.f32.mxu1 %v233_v38  ;;  %v295_v37 = vld [vmem:[%s1168_s28 + $0x328] sm:$0xff]  ;;  %v297_v38 = vld [vmem:[%s1168_s28 + $0x338] sm:$0xff] }
  0x95   : > { %503 = vmatmul.mubr.f32.gmra.mxu0 %v230_v39  ;;  %728 = vmatmul.mubr.f32.gmra.mxu1 %v232_v40  ;;  %v294_v39 = vld [vmem:[%s1168_s28 + $0x320] sm:$0xff]  ;;  %v296_v40 = vld [vmem:[%s1168_s28 + $0x330] sm:$0xff] }
  0x96   : > { %507 = vmatprep.mubr.f32.mxu0 %v235_v41  ;;  %732 = vmatprep.mubr.f32.mxu1 %v237_v42  ;;  %v299_v41 = vld [vmem:[%s1168_s28 + $0x348] sm:$0xff]  ;;  %v301_v42 = vld [vmem:[%s1168_s28 + $0x358] sm:$0xff] }
  0x99   : > { %508 = vmatmul.mubr.f32.gmra.mxu0 %v234_v43  ;;  %733 = vmatmul.mubr.f32.gmra.mxu1 %v236_v44  ;;  %v298_v43 = vld [vmem:[%s1168_s28 + $0x340] sm:$0xff]  ;;  %v300_v44 = vld [vmem:[%s1168_s28 + $0x350] sm:$0xff] }
  0x9a   : > { %512 = vmatprep.mubr.f32.mxu0 %v239_v45  ;;  %737 = vmatprep.mubr.f32.mxu1 %v241_v46  ;;  %v303_v45 = vld [vmem:[%s1168_s28 + $0x368] sm:$0xff]  ;;  %v305_v46 = vld [vmem:[%s1168_s28 + $0x378] sm:$0xff] }
  0x9d   : > { %513 = vmatmul.mubr.f32.gmra.mxu0 %v238_v47  ;;  %738 = vmatmul.mubr.f32.gmra.mxu1 %v240_v48  ;;  %v302_v47 = vld [vmem:[%s1168_s28 + $0x360] sm:$0xff]  ;;  %v304_v48 = vld [vmem:[%s1168_s28 + $0x370] sm:$0xff] }
  0x9e   : > { %517 = vmatprep.mubr.f32.mxu0 %v243_v49  ;;  %742 = vmatprep.mubr.f32.mxu1 %v245_v50  ;;  %v307_v49 = vld [vmem:[%s1168_s28 + $0x388] sm:$0xff]  ;;  %v309_v50 = vld [vmem:[%s1168_s28 + $0x398] sm:$0xff] }
  0xa1   : > { %518 = vmatmul.mubr.f32.gmra.mxu0 %v242_v51  ;;  %743 = vmatmul.mubr.f32.gmra.mxu1 %v244_v52  ;;  %v306_v51 = vld [vmem:[%s1168_s28 + $0x380] sm:$0xff]  ;;  %v308_v52 = vld [vmem:[%s1168_s28 + $0x390] sm:$0xff] }
  0xa2   : > { %522 = vmatprep.mubr.f32.mxu0 %v247_v53  ;;  %747 = vmatprep.mubr.f32.mxu1 %v249_v54  ;;  %v311_v53 = vld [vmem:[%s1168_s28 + $0x3a8] sm:$0xff]  ;;  %v313_v54 = vld [vmem:[%s1168_s28 + $0x3b8] sm:$0xff] }
  0xa5   : > { %523 = vmatmul.mubr.f32.gmra.mxu0 %v246_v55  ;;  %748 = vmatmul.mubr.f32.gmra.mxu1 %v248_v56  ;;  %v310_v55 = vld [vmem:[%s1168_s28 + $0x3a0] sm:$0xff]  ;;  %v312_v56 = vld [vmem:[%s1168_s28 + $0x3b0] sm:$0xff] }
  0xa6   : > { %527 = vmatprep.mubr.f32.mxu0 %v251_v57  ;;  %752 = vmatprep.mubr.f32.mxu1 %v253_v58  ;;  %v315_v57 = vld [vmem:[%s1168_s28 + $0x3c8] sm:$0xff]  ;;  %v317_v58 = vld [vmem:[%s1168_s28 + $0x3d8] sm:$0xff] }
  0xa9   : > { %528 = vmatmul.mubr.f32.gmra.mxu0 %v250_v59  ;;  %753 = vmatmul.mubr.f32.gmra.mxu1 %v252_v60  ;;  %v314_v59 = vld [vmem:[%s1168_s28 + $0x3c0] sm:$0xff]  ;;  %v316_v60 = vld [vmem:[%s1168_s28 + $0x3d0] sm:$0xff] }
  0xaa   : > { %532 = vmatprep.mubr.f32.mxu0 %v255_v61  ;;  %757 = vmatprep.mubr.f32.mxu1 %v257_v62  ;;  %v319_v61 = vld [vmem:[%s1168_s28 + $0x3e8] sm:$0xff]  ;;  %v321_v62 = vld [vmem:[%s1168_s28 + $0x3f8] sm:$0xff] }
  0xad   : > { %533 = vmatmul.mubr.f32.gmra.mxu0 %v254_v63  ;;  %758 = vmatmul.mubr.f32.gmra.mxu1 %v256_v1  ;;  %v318_v63 = vld [vmem:[%s1168_s28 + $0x3e0] sm:$0xff]  ;;  %v320_v1 = vld [vmem:[%s1168_s28 + $0x3f0] sm:$0xff]  ;;  %s1569_s28 = scalar_lea.vmem %s1682_s3, %s954_s11 }
  0xae   : > { %537 = vmatprep.mubr.f32.mxu0 %v259_v2  ;;  %762 = vmatprep.mubr.f32.mxu1 %v261_v3  ;;  %v1563_v2 = vld [vmem:[%s1681_s2] ss:$0 sm:$0xff] }
  0xb1   : > { %538 = vmatmul.mubr.f32.gmra.mxu0 %v258_v4  ;;  %763 = vmatmul.mubr.f32.gmra.mxu1 %v260_v5 }
  0xb2   : > { %542 = vmatprep.mubr.f32.mxu0 %v263_v6  ;;  %767 = vmatprep.mubr.f32.mxu1 %v265_v7 }
  0xb5   : > { %543 = vmatmul.mubr.f32.gmra.mxu0 %v262_v8  ;;  %768 = vmatmul.mubr.f32.gmra.mxu1 %v264_v0 }
  0xb6   : > { %547 = vmatprep.mubr.f32.mxu0 %v267_v9  ;;  %772 = vmatprep.mubr.f32.mxu1 %v269_v10 }
  0xb9   : > { %548 = vmatmul.mubr.f32.gmra.mxu0 %v266_v11  ;;  %773 = vmatmul.mubr.f32.gmra.mxu1 %v268_v12 }
  0xba   : > { %552 = vmatprep.mubr.f32.mxu0 %v271_v13  ;;  %777 = vmatprep.mubr.f32.mxu1 %v273_v14 }
  0xbd   : > { %553 = vmatmul.mubr.f32.gmra.mxu0 %v270_v15  ;;  %778 = vmatmul.mubr.f32.gmra.mxu1 %v272_v16 }
  0xbe   : > { %557 = vmatprep.mubr.f32.mxu0 %v275_v17  ;;  %782 = vmatprep.mubr.f32.mxu1 %v277_v18 }
  0xc1   : > { %558 = vmatmul.mubr.f32.gmra.mxu0 %v274_v19  ;;  %783 = vmatmul.mubr.f32.gmra.mxu1 %v276_v20 }
  0xc2   : > { %562 = vmatprep.mubr.f32.mxu0 %v279_v21  ;;  %787 = vmatprep.mubr.f32.mxu1 %v281_v22 }
  0xc5   : > { %563 = vmatmul.mubr.f32.gmra.mxu0 %v278_v23  ;;  %788 = vmatmul.mubr.f32.gmra.mxu1 %v280_v24 }
  0xc6   : > { %567 = vmatprep.mubr.f32.mxu0 %v283_v25  ;;  %792 = vmatprep.mubr.f32.mxu1 %v285_v26 }
  0xc9   : > { %568 = vmatmul.mubr.f32.gmra.mxu0 %v282_v27  ;;  %793 = vmatmul.mubr.f32.gmra.mxu1 %v284_v28 }
  0xca   : > { %572 = vmatprep.mubr.f32.mxu0 %v287_v29  ;;  %797 = vmatprep.mubr.f32.mxu1 %v289_v30 }
  0xcd   : > { %573 = vmatmul.mubr.f32.gmra.mxu0 %v286_v31  ;;  %798 = vmatmul.mubr.f32.gmra.mxu1 %v288_v32 }
  0xce   : > { %577 = vmatprep.mubr.f32.mxu0 %v291_v33  ;;  %802 = vmatprep.mubr.f32.mxu1 %v293_v34 }
  0xd1   : > { %578 = vmatmul.mubr.f32.gmra.mxu0 %v290_v35  ;;  %803 = vmatmul.mubr.f32.gmra.mxu1 %v292_v36 }
  0xd2   : > { %582 = vmatprep.mubr.f32.mxu0 %v295_v37  ;;  %807 = vmatprep.mubr.f32.mxu1 %v297_v38 }
  0xd5   : > { %583 = vmatmul.mubr.f32.gmra.mxu0 %v294_v39  ;;  %808 = vmatmul.mubr.f32.gmra.mxu1 %v296_v40 }
  0xd6   : > { %587 = vmatprep.mubr.f32.mxu0 %v299_v41  ;;  %812 = vmatprep.mubr.f32.mxu1 %v301_v42 }
  0xd9   : > { %588 = vmatmul.mubr.f32.gmra.mxu0 %v298_v43  ;;  %813 = vmatmul.mubr.f32.gmra.mxu1 %v300_v44 }
  0xda   : > { %592 = vmatprep.mubr.f32.mxu0 %v303_v45  ;;  %817 = vmatprep.mubr.f32.mxu1 %v305_v46 }
  0xdd   : > { %593 = vmatmul.mubr.f32.gmra.mxu0 %v302_v47  ;;  %818 = vmatmul.mubr.f32.gmra.mxu1 %v304_v48 }
  0xde   : > { %597 = vmatprep.mubr.f32.mxu0 %v307_v49  ;;  %822 = vmatprep.mubr.f32.mxu1 %v309_v50 }
  0xe1   : > { %598 = vmatmul.mubr.f32.gmra.mxu0 %v306_v51  ;;  %823 = vmatmul.mubr.f32.gmra.mxu1 %v308_v52 }
  0xe2   : > { %602 = vmatprep.mubr.f32.mxu0 %v311_v53  ;;  %827 = vmatprep.mubr.f32.mxu1 %v313_v54 }
  0xe5   : > { %603 = vmatmul.mubr.f32.gmra.mxu0 %v310_v55  ;;  %828 = vmatmul.mubr.f32.gmra.mxu1 %v312_v56 }
  0xe6   : > { %607 = vmatprep.mubr.f32.mxu0 %v315_v57  ;;  %832 = vmatprep.mubr.f32.mxu1 %v317_v58 }
  0xe9   : > { %608 = vmatmul.mubr.f32.gmra.mxu0 %v314_v59  ;;  %833 = vmatmul.mubr.f32.gmra.mxu1 %v316_v60 }
  0xea   : > { %612 = vmatprep.mubr.f32.mxu0 %v319_v61  ;;  %837 = vmatprep.mubr.f32.mxu1 %v321_v62 }
  0xed   : > { %613 = vmatmul.mubr.f32.gmra.mxu0 %v318_v63  ;;  %838 = vmatmul.mubr.f32.gmra.mxu1 %v320_v1 }
 0x131   : > { %v459_v3 = vpop.f32.mrf.mxu0  ;;  %v684_v4 = vpop.f32.mrf.mxu1 }
 0x132   : > { %v460_v5 = vadd.f32 %v1563_v2, %v459_v3 }
 0x133   : > { %v461_v6 = vpop.f32.mrf.mxu0  ;;  %v686_v7 = vpop.f32.mrf.mxu1 }
 0x134   : > { %v685_v8 = vadd.f32 %v684_v4, %v460_v5 }
 0x135   : > { %v464_v0 = vpop.f32.mrf.mxu0  ;;  %v689_v9 = vpop.f32.mrf.mxu1 }
 0x136   : > { %844 = vst.msk [vmem:[%s1569_s28] sm:$0xff] %vm843_vm0, %v685_v8  ;;  %v465_v10 = vadd.f32 %v1563_v2, %v464_v0 }
 0x137   : > { %v466_v11 = vpop.f32.mrf.mxu0  ;;  %v691_v12 = vpop.f32.mrf.mxu1 }
 0x138   : > { %v690_v13 = vadd.f32 %v689_v9, %v465_v10 }
 0x139   : > { %v469_v14 = vpop.f32.mrf.mxu0  ;;  %v694_v15 = vpop.f32.mrf.mxu1 }
 0x13a   : > { %845 = vst.msk [vmem:[%s1569_s28 + $0x8] sm:$0xff] %vm843_vm0, %v690_v13  ;;  %v470_v16 = vadd.f32 %v1563_v2, %v469_v14 }
 0x13b   : > { %v471_v17 = vpop.f32.mrf.mxu0  ;;  %v696_v18 = vpop.f32.mrf.mxu1 }
 0x13c   : > { %v695_v19 = vadd.f32 %v694_v15, %v470_v16 }
 0x13d   : > { %v474_v20 = vpop.f32.mrf.mxu0  ;;  %v699_v21 = vpop.f32.mrf.mxu1 }
 0x13e   : > { %846 = vst.msk [vmem:[%s1569_s28 + $0x10] sm:$0xff] %vm843_vm0, %v695_v19  ;;  %v475_v22 = vadd.f32 %v1563_v2, %v474_v20 }
 0x13f   : > { %v476_v23 = vpop.f32.mrf.mxu0  ;;  %v701_v24 = vpop.f32.mrf.mxu1 }
 0x140   : > { %v700_v25 = vadd.f32 %v699_v21, %v475_v22 }
 0x141   : > { %v479_v26 = vpop.f32.mrf.mxu0  ;;  %v704_v27 = vpop.f32.mrf.mxu1 }
 0x142   : > { %847 = vst.msk [vmem:[%s1569_s28 + $0x18] sm:$0xff] %vm843_vm0, %v700_v25  ;;  %v480_v28 = vadd.f32 %v1563_v2, %v479_v26 }
 0x143   : > { %v481_v29 = vpop.f32.mrf.mxu0  ;;  %v706_v30 = vpop.f32.mrf.mxu1 }
 0x144   : > { %v705_v31 = vadd.f32 %v704_v27, %v480_v28 }
 0x145   : > { %v484_v32 = vpop.f32.mrf.mxu0  ;;  %v709_v33 = vpop.f32.mrf.mxu1 }
 0x146   : > { %848 = vst.msk [vmem:[%s1569_s28 + $0x20] sm:$0xff] %vm843_vm0, %v705_v31  ;;  %v485_v34 = vadd.f32 %v1563_v2, %v484_v32 }
 0x147   : > { %v486_v35 = vpop.f32.mrf.mxu0  ;;  %v711_v36 = vpop.f32.mrf.mxu1 }
 0x148   : > { %v710_v37 = vadd.f32 %v709_v33, %v485_v34 }
 0x149   : > { %v489_v38 = vpop.f32.mrf.mxu0  ;;  %v714_v39 = vpop.f32.mrf.mxu1 }
 0x14a   : > { %849 = vst.msk [vmem:[%s1569_s28 + $0x28] sm:$0xff] %vm843_vm0, %v710_v37  ;;  %v490_v40 = vadd.f32 %v1563_v2, %v489_v38 }
 0x14b   : > { %v491_v41 = vpop.f32.mrf.mxu0  ;;  %v716_v42 = vpop.f32.mrf.mxu1 }
 0x14c   : > { %v715_v43 = vadd.f32 %v714_v39, %v490_v40 }
 0x14d   : > { %v494_v44 = vpop.f32.mrf.mxu0  ;;  %v719_v45 = vpop.f32.mrf.mxu1 }
 0x14e   : > { %850 = vst.msk [vmem:[%s1569_s28 + $0x30] sm:$0xff] %vm843_vm0, %v715_v43  ;;  %v495_v46 = vadd.f32 %v1563_v2, %v494_v44 }
 0x14f   : > { %v496_v47 = vpop.f32.mrf.mxu0  ;;  %v721_v48 = vpop.f32.mrf.mxu1 }
 0x150   : > { %v720_v49 = vadd.f32 %v719_v45, %v495_v46 }
 0x151   : > { %v499_v50 = vpop.f32.mrf.mxu0  ;;  %v724_v51 = vpop.f32.mrf.mxu1 }
 0x152   : > { %851 = vst.msk [vmem:[%s1569_s28 + $0x38] sm:$0xff] %vm843_vm0, %v720_v49  ;;  %v500_v52 = vadd.f32 %v1563_v2, %v499_v50 }
 0x153   : > { %v501_v53 = vpop.f32.mrf.mxu0  ;;  %v726_v54 = vpop.f32.mrf.mxu1 }
 0x154   : > { %v725_v55 = vadd.f32 %v724_v51, %v500_v52 }
 0x155   : > { %v504_v56 = vpop.f32.mrf.mxu0  ;;  %v729_v57 = vpop.f32.mrf.mxu1 }
 0x156   : > { %852 = vst.msk [vmem:[%s1569_s28 + $0x40] sm:$0xff] %vm843_vm0, %v725_v55  ;;  %v505_v58 = vadd.f32 %v1563_v2, %v504_v56 }
 0x157   : > { %v506_v59 = vpop.f32.mrf.mxu0  ;;  %v731_v60 = vpop.f32.mrf.mxu1 }
 0x158   : > { %v730_v61 = vadd.f32 %v729_v57, %v505_v58 }
 0x159   : > { %v509_v62 = vpop.f32.mrf.mxu0  ;;  %v734_v63 = vpop.f32.mrf.mxu1 }
 0x15a   : > { %853 = vst.msk [vmem:[%s1569_s28 + $0x48] sm:$0xff] %vm843_vm0, %v730_v61  ;;  %v510_v1 = vadd.f32 %v1563_v2, %v509_v62 }
 0x15b   : > { %v511_v3 = vpop.f32.mrf.mxu0  ;;  %v736_v4 = vpop.f32.mrf.mxu1 }
 0x15c   : > { %v735_v5 = vadd.f32 %v734_v63, %v510_v1 }
 0x15d   : > { %v514_v6 = vpop.f32.mrf.mxu0  ;;  %v739_v7 = vpop.f32.mrf.mxu1 }
 0x15e   : > { %854 = vst.msk [vmem:[%s1569_s28 + $0x50] sm:$0xff] %vm843_vm0, %v735_v5  ;;  %v515_v8 = vadd.f32 %v1563_v2, %v514_v6 }
 0x15f   : > { %v516_v0 = vpop.f32.mrf.mxu0  ;;  %v741_v9 = vpop.f32.mrf.mxu1 }
 0x160   : > { %v740_v10 = vadd.f32 %v739_v7, %v515_v8 }
 0x161   : > { %v519_v11 = vpop.f32.mrf.mxu0  ;;  %v744_v12 = vpop.f32.mrf.mxu1 }
 0x162   : > { %855 = vst.msk [vmem:[%s1569_s28 + $0x58] sm:$0xff] %vm843_vm0, %v740_v10  ;;  %v520_v13 = vadd.f32 %v1563_v2, %v519_v11 }
 0x163   : > { %v521_v14 = vpop.f32.mrf.mxu0  ;;  %v746_v15 = vpop.f32.mrf.mxu1 }
 0x164   : > { %v745_v16 = vadd.f32 %v744_v12, %v520_v13 }
 0x165   : > { %v524_v17 = vpop.f32.mrf.mxu0  ;;  %v749_v18 = vpop.f32.mrf.mxu1 }
 0x166   : > { %856 = vst.msk [vmem:[%s1569_s28 + $0x60] sm:$0xff] %vm843_vm0, %v745_v16  ;;  %v525_v19 = vadd.f32 %v1563_v2, %v524_v17 }
 0x167   : > { %v526_v20 = vpop.f32.mrf.mxu0  ;;  %v751_v21 = vpop.f32.mrf.mxu1 }
 0x168   : > { %v750_v22 = vadd.f32 %v749_v18, %v525_v19 }
 0x169   : > { %v529_v23 = vpop.f32.mrf.mxu0  ;;  %v754_v24 = vpop.f32.mrf.mxu1 }
 0x16a   : > { %857 = vst.msk [vmem:[%s1569_s28 + $0x68] sm:$0xff] %vm843_vm0, %v750_v22  ;;  %v530_v25 = vadd.f32 %v1563_v2, %v529_v23 }
 0x16b   : > { %v531_v26 = vpop.f32.mrf.mxu0  ;;  %v756_v27 = vpop.f32.mrf.mxu1 }
 0x16c   : > { %v755_v28 = vadd.f32 %v754_v24, %v530_v25 }
 0x16d   : > { %v534_v29 = vpop.f32.mrf.mxu0  ;;  %v759_v30 = vpop.f32.mrf.mxu1 }
 0x16e   : > { %858 = vst.msk [vmem:[%s1569_s28 + $0x70] sm:$0xff] %vm843_vm0, %v755_v28  ;;  %v535_v31 = vadd.f32 %v1563_v2, %v534_v29 }
 0x16f   : > { %v536_v32 = vpop.f32.mrf.mxu0  ;;  %v761_v33 = vpop.f32.mrf.mxu1 }
 0x170   : > { %v760_v34 = vadd.f32 %v759_v30, %v535_v31 }
 0x171   : > { %v539_v35 = vpop.f32.mrf.mxu0  ;;  %v764_v36 = vpop.f32.mrf.mxu1 }
 0x172   : > { %859 = vst.msk [vmem:[%s1569_s28 + $0x78] sm:$0xff] %vm843_vm0, %v760_v34  ;;  %v540_v37 = vadd.f32 %v1563_v2, %v539_v35 }
 0x173   : > { %v541_v38 = vpop.f32.mrf.mxu0  ;;  %v766_v39 = vpop.f32.mrf.mxu1 }
 0x174   : > { %v765_v40 = vadd.f32 %v764_v36, %v540_v37 }
 0x175   : > { %v544_v41 = vpop.f32.mrf.mxu0  ;;  %v769_v42 = vpop.f32.mrf.mxu1 }
 0x176   : > { %860 = vst.msk [vmem:[%s1569_s28 + $0x80] sm:$0xff] %vm843_vm0, %v765_v40  ;;  %v545_v43 = vadd.f32 %v1563_v2, %v544_v41 }
 0x177   : > { %v546_v44 = vpop.f32.mrf.mxu0  ;;  %v771_v45 = vpop.f32.mrf.mxu1 }
 0x178   : > { %v770_v46 = vadd.f32 %v769_v42, %v545_v43 }
 0x179   : > { %v549_v47 = vpop.f32.mrf.mxu0  ;;  %v774_v48 = vpop.f32.mrf.mxu1 }
 0x17a   : > { %861 = vst.msk [vmem:[%s1569_s28 + $0x88] sm:$0xff] %vm843_vm0, %v770_v46  ;;  %v550_v49 = vadd.f32 %v1563_v2, %v549_v47 }
 0x17b   : > { %v551_v50 = vpop.f32.mrf.mxu0  ;;  %v776_v51 = vpop.f32.mrf.mxu1 }
 0x17c   : > { %v775_v52 = vadd.f32 %v774_v48, %v550_v49 }
 0x17d   : > { %v554_v53 = vpop.f32.mrf.mxu0  ;;  %v779_v54 = vpop.f32.mrf.mxu1 }
 0x17e   : > { %862 = vst.msk [vmem:[%s1569_s28 + $0x90] sm:$0xff] %vm843_vm0, %v775_v52  ;;  %v555_v55 = vadd.f32 %v1563_v2, %v554_v53 }
 0x17f   : > { %v556_v56 = vpop.f32.mrf.mxu0  ;;  %v781_v57 = vpop.f32.mrf.mxu1 }
 0x180   : > { %v780_v58 = vadd.f32 %v779_v54, %v555_v55 }
 0x181   : > { %v559_v59 = vpop.f32.mrf.mxu0  ;;  %v784_v60 = vpop.f32.mrf.mxu1 }
 0x182   : > { %863 = vst.msk [vmem:[%s1569_s28 + $0x98] sm:$0xff] %vm843_vm0, %v780_v58  ;;  %v560_v61 = vadd.f32 %v1563_v2, %v559_v59 }
 0x183   : > { %v561_v62 = vpop.f32.mrf.mxu0  ;;  %v786_v63 = vpop.f32.mrf.mxu1 }
 0x184   : > { %v785_v1 = vadd.f32 %v784_v60, %v560_v61 }
 0x185   : > { %v564_v3 = vpop.f32.mrf.mxu0  ;;  %v789_v4 = vpop.f32.mrf.mxu1 }
 0x186   : > { %864 = vst.msk [vmem:[%s1569_s28 + $0xa0] sm:$0xff] %vm843_vm0, %v785_v1  ;;  %v565_v5 = vadd.f32 %v1563_v2, %v564_v3 }
 0x187   : > { %v566_v6 = vpop.f32.mrf.mxu0  ;;  %v791_v7 = vpop.f32.mrf.mxu1 }
 0x188   : > { %v790_v8 = vadd.f32 %v789_v4, %v565_v5 }
 0x189   : > { %v569_v0 = vpop.f32.mrf.mxu0  ;;  %v794_v9 = vpop.f32.mrf.mxu1 }
 0x18a   : > { %865 = vst.msk [vmem:[%s1569_s28 + $0xa8] sm:$0xff] %vm843_vm0, %v790_v8  ;;  %v570_v10 = vadd.f32 %v1563_v2, %v569_v0 }
 0x18b   : > { %v571_v11 = vpop.f32.mrf.mxu0  ;;  %v796_v12 = vpop.f32.mrf.mxu1 }
 0x18c   : > { %v795_v13 = vadd.f32 %v794_v9, %v570_v10 }
 0x18d   : > { %v574_v14 = vpop.f32.mrf.mxu0  ;;  %v799_v15 = vpop.f32.mrf.mxu1 }
 0x18e   : > { %866 = vst.msk [vmem:[%s1569_s28 + $0xb0] sm:$0xff] %vm843_vm0, %v795_v13  ;;  %v575_v16 = vadd.f32 %v1563_v2, %v574_v14 }
 0x18f   : > { %v576_v17 = vpop.f32.mrf.mxu0  ;;  %v801_v18 = vpop.f32.mrf.mxu1 }
 0x190   : > { %v800_v19 = vadd.f32 %v799_v15, %v575_v16 }
 0x191   : > { %v579_v20 = vpop.f32.mrf.mxu0  ;;  %v804_v21 = vpop.f32.mrf.mxu1 }
 0x192   : > { %867 = vst.msk [vmem:[%s1569_s28 + $0xb8] sm:$0xff] %vm843_vm0, %v800_v19  ;;  %v580_v22 = vadd.f32 %v1563_v2, %v579_v20 }
 0x193   : > { %v581_v23 = vpop.f32.mrf.mxu0  ;;  %v806_v24 = vpop.f32.mrf.mxu1 }
 0x194   : > { %v805_v25 = vadd.f32 %v804_v21, %v580_v22 }
 0x195   : > { %v584_v26 = vpop.f32.mrf.mxu0  ;;  %v809_v27 = vpop.f32.mrf.mxu1 }
 0x196   : > { %868 = vst.msk [vmem:[%s1569_s28 + $0xc0] sm:$0xff] %vm843_vm0, %v805_v25  ;;  %v585_v28 = vadd.f32 %v1563_v2, %v584_v26 }
 0x197   : > { %v586_v29 = vpop.f32.mrf.mxu0  ;;  %v811_v30 = vpop.f32.mrf.mxu1 }
 0x198   : > { %v810_v31 = vadd.f32 %v809_v27, %v585_v28 }
 0x199   : > { %v589_v32 = vpop.f32.mrf.mxu0  ;;  %v814_v33 = vpop.f32.mrf.mxu1 }
 0x19a   : > { %869 = vst.msk [vmem:[%s1569_s28 + $0xc8] sm:$0xff] %vm843_vm0, %v810_v31  ;;  %v590_v34 = vadd.f32 %v1563_v2, %v589_v32 }
 0x19b   : > { %v591_v35 = vpop.f32.mrf.mxu0  ;;  %v816_v36 = vpop.f32.mrf.mxu1 }
 0x19c   : > { %v815_v37 = vadd.f32 %v814_v33, %v590_v34 }
 0x19d   : > { %v594_v38 = vpop.f32.mrf.mxu0  ;;  %v819_v39 = vpop.f32.mrf.mxu1 }
 0x19e   : > { %870 = vst.msk [vmem:[%s1569_s28 + $0xd0] sm:$0xff] %vm843_vm0, %v815_v37  ;;  %v595_v40 = vadd.f32 %v1563_v2, %v594_v38 }
 0x19f   : > { %v596_v41 = vpop.f32.mrf.mxu0  ;;  %v821_v42 = vpop.f32.mrf.mxu1 }
 0x1a0   : > { %v820_v43 = vadd.f32 %v819_v39, %v595_v40 }
 0x1a1   : > { %v599_v44 = vpop.f32.mrf.mxu0  ;;  %v824_v45 = vpop.f32.mrf.mxu1 }
 0x1a2   : > { %871 = vst.msk [vmem:[%s1569_s28 + $0xd8] sm:$0xff] %vm843_vm0, %v820_v43  ;;  %v600_v46 = vadd.f32 %v1563_v2, %v599_v44 }
 0x1a3   : > { %v601_v47 = vpop.f32.mrf.mxu0  ;;  %v826_v48 = vpop.f32.mrf.mxu1 }
 0x1a4   : > { %v825_v49 = vadd.f32 %v824_v45, %v600_v46 }
 0x1a5   : > { %v604_v50 = vpop.f32.mrf.mxu0  ;;  %v829_v51 = vpop.f32.mrf.mxu1 }
 0x1a6   : > { %872 = vst.msk [vmem:[%s1569_s28 + $0xe0] sm:$0xff] %vm843_vm0, %v825_v49  ;;  %v605_v52 = vadd.f32 %v1563_v2, %v604_v50 }
 0x1a7   : > { %v606_v53 = vpop.f32.mrf.mxu0  ;;  %v831_v54 = vpop.f32.mrf.mxu1 }
 0x1a8   : > { %v830_v55 = vadd.f32 %v829_v51, %v605_v52 }
 0x1a9   : > { %v609_v56 = vpop.f32.mrf.mxu0  ;;  %v834_v57 = vpop.f32.mrf.mxu1 }
 0x1aa   : > { %873 = vst.msk [vmem:[%s1569_s28 + $0xe8] sm:$0xff] %vm843_vm0, %v830_v55  ;;  %v610_v58 = vadd.f32 %v1563_v2, %v609_v56 }
 0x1ab   : > { %v611_v59 = vpop.f32.mrf.mxu0  ;;  %v836_v60 = vpop.f32.mrf.mxu1 }
 0x1ac   : > { %v835_v61 = vadd.f32 %v834_v57, %v610_v58 }
 0x1ad   : > { %v614_v62 = vpop.f32.mrf.mxu0  ;;  %v839_v63 = vpop.f32.mrf.mxu1 }
 0x1ae   : > { %874 = vst.msk [vmem:[%s1569_s28 + $0xf0] sm:$0xff] %vm843_vm0, %v835_v61  ;;  %v615_v1 = vadd.f32 %v1563_v2, %v614_v62 }
 0x1af   : > { %v616_v3 = vpop.f32.mrf.mxu0  ;;  %v841_v4 = vpop.f32.mrf.mxu1 }
 0x1b0   : > { %v840_v5 = vadd.f32 %v839_v63, %v615_v1 }
 0x1b2   : > { %875 = vst.msk [vmem:[%s1569_s28 + $0xf8] sm:$0xff] %vm843_vm0, %v840_v5 }
 0x1b3 PF: > { %p13_p9 = scmp.ge.s32.totalorder %s1110_s17, 4   ;;  %s1688_s12 = smov %s1056_s13 }
 0x1b4   : > { %s1689_s13 = smov %s1060_s14  ;;  %s1690_s14 = smov %s1120_s20 }
 0x1b5   : > { %s1691_s15 = smov %s1110_s17  ;;  %15 = sbr.rel (!%p13_p9) target bundleno = 3 (0x3), region = 72 }
 0x1ba   :  { %898 = vsyncpa [#allocation3], 1 }
 0x1bb   :  { %900 = vsyncpa [#allocation3 + $0x1], 1 }

</bundles_post_ra>
